<compile_context>
chip_gen: v5e
topology: v5e:2x2
jax: 0.10.0
libtpu: 0.0.40
codegen_flags: <defaults>
</compile_context>

<pallas_src>
import jax
import jax.numpy as jnp
from jax.experimental import pallas as pl
from jax.experimental.pallas import tpu as pltpu

_EPS = 1e-8  # torch.nn.functional.cosine_similarity default


def _round_up(x, m):
    return ((x + m - 1) // m) * m


def _cosine_kernel(x_ref, y_ref, cos_ref, dot_acc, xx_acc, yy_acc):
    """Grid = (B_tiles [parallel], D_tiles [arbitrary, reduction])."""
    k = pl.program_id(1)

    @pl.when(k == 0)
    def _init():
        dot_acc[...] = jnp.zeros_like(dot_acc)
        xx_acc[...] = jnp.zeros_like(xx_acc)
        yy_acc[...] = jnp.zeros_like(yy_acc)

    x = x_ref[...].astype(jnp.float32)
    y = y_ref[...].astype(jnp.float32)

    # Per-row partial reductions along the lane axis; keepdims keeps
    # everything in clean (sublane, lane) 2-D vreg layouts.
    dot_acc[...] += jnp.sum(x * y, axis=-1, keepdims=True)
    xx_acc[...] += jnp.sum(x * x, axis=-1, keepdims=True)
    yy_acc[...] += jnp.sum(y * y, axis=-1, keepdims=True)

    @pl.when(k == pl.num_programs(1) - 1)
    def _finalize():
        # Current PyTorch cosine_similarity clamps each norm separately.
        nx = jnp.maximum(jnp.sqrt(xx_acc[...]), _EPS)
        ny = jnp.maximum(jnp.sqrt(yy_acc[...]), _EPS)
        cos_ref[...] = dot_acc[...] / (nx * ny)


def _choose_tiles(b, d, itemsize):
    # Sublane granularity: 8 for 32-bit, 16 for 16-bit (bf16 packing).
    sub = 16 if itemsize <= 2 else 8
    tb = min(_round_up(b, sub), 256)
    td = min(_round_up(d, 128), 2048)
    # Worst case: 2 inputs * 2 pipeline buffers * 256*2048*4B = 8 MiB, which
    # fits the default scoped-VMEM limit on v5e/v6e/v7x with headroom.
    return tb, td


def _cosine_reshape_ref(x2, y2):
    dot = jnp.sum(x2 * y2, axis=-1)
    nx = jnp.maximum(jnp.sqrt(jnp.sum(x2 * x2, axis=-1)), _EPS)
    ny = jnp.maximum(jnp.sqrt(jnp.sum(y2 * y2, axis=-1)), _EPS)
    return jnp.mean(1.0 - dot / (nx * ny))


def cosine_reshape(x, y, *, tb=None, td=None, force_pallas=False):
    """x, y: (b, c, h) arrays. Returns scalar float32 = mean(1 - cos_sim)."""
    assert x.shape == y.shape and x.ndim == 3
    b, c, h = x.shape
    d = c * h

    # Glue: einops.rearrange 'b c h -> b (c h)'
    x2 = x.reshape(b, d)
    y2 = y.reshape(b, d)

    # Tiny problems: per-call kernel overhead dwarfs the memory traffic.
    total_bytes = 2 * b * d * x.dtype.itemsize
    if not force_pallas and total_bytes < (2 << 20):
        return _cosine_reshape_ref(x2.astype(jnp.float32),
                                   y2.astype(jnp.float32))

    auto_tb, auto_td = _choose_tiles(b, d, x.dtype.itemsize)
    tb = auto_tb if tb is None else tb
    td = auto_td if td is None else td

    bp = _round_up(b, tb)
    dp = _round_up(d, td)
    if (bp, dp) != (b, d):
        # Zero padding: padded lanes contribute 0 to dot/xx/yy; padded rows
        # are sliced away before the final mean.
        x2 = jnp.pad(x2, ((0, bp - b), (0, dp - d)))
        y2 = jnp.pad(y2, ((0, bp - b), (0, dp - d)))

    grid = (bp // tb, dp // td)

    cos = pl.pallas_call(
        _cosine_kernel,
        out_shape=jax.ShapeDtypeStruct((bp, 1), jnp.float32),
        grid_spec=pltpu.PrefetchScalarGridSpec(
            num_scalar_prefetch=0,
            grid=grid,
            in_specs=[
                pl.BlockSpec((tb, td), lambda i, k: (i, k)),
                pl.BlockSpec((tb, td), lambda i, k: (i, k)),
            ],
            out_specs=pl.BlockSpec((tb, 1), lambda i, k: (i, 0)),
            scratch_shapes=[
                pltpu.VMEM((tb, 1), jnp.float32),  # dot accumulator
                pltpu.VMEM((tb, 1), jnp.float32),  # ||x||^2 accumulator
                pltpu.VMEM((tb, 1), jnp.float32),  # ||y||^2 accumulator
            ],
        ),
        compiler_params=pltpu.CompilerParams(
            dimension_semantics=("parallel", "arbitrary")),
    )(x2, y2)

    # Final tiny reduction in the wrapper (per-row cos -> scalar).
    return jnp.mean(1.0 - cos[:b, 0])


if __name__ == "__main__":
    key = jax.random.PRNGKey(0)

    # Test 1: small shapes consistent with the module's (b, c, h) inputs.
    b, c, h = 2, 4, 16
    kx, ky, kx2, ky2 = jax.random.split(key, 4)
    x = jax.random.normal(kx, (b, c, h), dtype=jnp.float32)
    y = jax.random.normal(ky, (b, c, h), dtype=jnp.float32)

    result = jax.block_until_ready(cosine_reshape(x, y, force_pallas=True))
    ref = _cosine_reshape_ref(x.reshape(b, -1), y.reshape(b, -1))
    assert jnp.allclose(result, ref, atol=1e-5, rtol=1e-5), (result, ref)

    # Test 2: force small tiles so the multi-step reduction / accumulator
    # path (grid over D, init/finalize via pl.when) is exercised too.
    b2, c2, h2 = 6, 4, 100  # d = 400 -> padded to 512 -> 4 D-tiles of 128
    x2 = jax.random.normal(kx2, (b2, c2, h2), dtype=jnp.float32)
    y2 = jax.random.normal(ky2, (b2, c2, h2), dtype=jnp.float32)

    result2 = jax.block_until_ready(
        cosine_reshape(x2, y2, tb=8, td=128, force_pallas=True))
    ref2 = _cosine_reshape_ref(x2.reshape(b2, -1), y2.reshape(b2, -1))
    assert jnp.allclose(result2, ref2, atol=1e-5, rtol=1e-5), (result2, ref2)

    print("KERNEL_OK")
</pallas_src>

<mosaic_0001>
module attributes {stable_mosaic.version = 11 : i64} {
  func.func @_cosine_kernel(%arg0: i32, %arg1: i32, %arg2: memref<8x128xf32, #tpu.memory_space<vmem>>, %arg3: memref<8x128xf32, #tpu.memory_space<vmem>>, %arg4: memref<8x1xf32, #tpu.memory_space<vmem>>, %arg5: memref<8x1xf32, #tpu.memory_space<vmem>>, %arg6: memref<8x1xf32, #tpu.memory_space<vmem>>, %arg7: memref<8x1xf32, #tpu.memory_space<vmem>>) attributes {dimension_semantics = [#tpu.dimension_semantics<parallel>, #tpu.dimension_semantics<arbitrary>], iteration_bounds = array<i64: 1, 1>, scalar_prefetch = 0 : i64, scratch_operands = 3 : i64, tpu.core_type = #tpu.core_type<tc>, window_params = [{transform_indices = @transform_0, window_bounds = array<i64: 8, 128>}, {transform_indices = @transform_1, window_bounds = array<i64: 8, 128>}, {transform_indices = @transform_2, window_bounds = array<i64: 8, 1>}]} {
    %c0_i32 = arith.constant 0 : i32
    %0 = arith.cmpi eq, %arg1, %c0_i32 : i32
    %1 = arith.extui %0 : i1 to i32
    %c0_i32_0 = arith.constant 0 : i32
    %2 = arith.cmpi ne, %1, %c0_i32_0 : i32
    scf.if %2 {
      %cst_20 = arith.constant 0.000000e+00 : f32
      %26 = vector.broadcast %cst_20 : f32 to vector<8x1xf32>
      %c0_21 = arith.constant 0 : index
      %c0_22 = arith.constant 0 : index
      %27 = vector.load %arg5[%c0_21, %c0_22] : memref<8x1xf32, #tpu.memory_space<vmem>>, vector<8x1xf32>
      tpu.vector_store %arg5[%c0_21, %c0_22], %26 {strides = array<i32>} : memref<8x1xf32, #tpu.memory_space<vmem>>, vector<8x1xf32>,
      %cst_23 = arith.constant 0.000000e+00 : f32
      %28 = vector.broadcast %cst_23 : f32 to vector<8x1xf32>
      %c0_24 = arith.constant 0 : index
      %c0_25 = arith.constant 0 : index
      %29 = vector.load %arg6[%c0_24, %c0_25] : memref<8x1xf32, #tpu.memory_space<vmem>>, vector<8x1xf32>
      tpu.vector_store %arg6[%c0_24, %c0_25], %28 {strides = array<i32>} : memref<8x1xf32, #tpu.memory_space<vmem>>, vector<8x1xf32>,
      %cst_26 = arith.constant 0.000000e+00 : f32
      %30 = vector.broadcast %cst_26 : f32 to vector<8x1xf32>
      %c0_27 = arith.constant 0 : index
      %c0_28 = arith.constant 0 : index
      %31 = vector.load %arg7[%c0_27, %c0_28] : memref<8x1xf32, #tpu.memory_space<vmem>>, vector<8x1xf32>
      tpu.vector_store %arg7[%c0_27, %c0_28], %30 {strides = array<i32>} : memref<8x1xf32, #tpu.memory_space<vmem>>, vector<8x1xf32>,
    } else {
    }
    %c0 = arith.constant 0 : index
    %c0_1 = arith.constant 0 : index
    %3 = vector.load %arg2[%c0, %c0_1] : memref<8x128xf32, #tpu.memory_space<vmem>>, vector<8x128xf32>
    %c0_2 = arith.constant 0 : index
    %c0_3 = arith.constant 0 : index
    %4 = vector.load %arg3[%c0_2, %c0_3] : memref<8x128xf32, #tpu.memory_space<vmem>>, vector<8x128xf32>
    %c0_4 = arith.constant 0 : index
    %c0_5 = arith.constant 0 : index
    %5 = vector.load %arg5[%c0_4, %c0_5] : memref<8x1xf32, #tpu.memory_space<vmem>>, vector<8x1xf32>
    %6 = arith.mulf %3, %4 : vector<8x128xf32>
    %cst = arith.constant dense<0.000000e+00> : vector<8xf32>
    %7 = vector.multi_reduction <add>, %6, %cst [1] : vector<8x128xf32> to vector<8xf32>
    %8 = vector.shape_cast %7 : vector<8xf32> to vector<8x1xf32>
    %9 = arith.addf %5, %8 : vector<8x1xf32>
    %c0_6 = arith.constant 0 : index
    %c0_7 = arith.constant 0 : index
    %10 = vector.load %arg5[%c0_6, %c0_7] : memref<8x1xf32, #tpu.memory_space<vmem>>, vector<8x1xf32>
    tpu.vector_store %arg5[%c0_6, %c0_7], %9 {strides = array<i32>} : memref<8x1xf32, #tpu.memory_space<vmem>>, vector<8x1xf32>,
    %c0_8 = arith.constant 0 : index
    %c0_9 = arith.constant 0 : index
    %11 = vector.load %arg6[%c0_8, %c0_9] : memref<8x1xf32, #tpu.memory_space<vmem>>, vector<8x1xf32>
    %12 = arith.mulf %3, %3 : vector<8x128xf32>
    %cst_10 = arith.constant dense<0.000000e+00> : vector<8xf32>
    %13 = vector.multi_reduction <add>, %12, %cst_10 [1] : vector<8x128xf32> to vector<8xf32>
    %14 = vector.shape_cast %13 : vector<8xf32> to vector<8x1xf32>
    %15 = arith.addf %11, %14 : vector<8x1xf32>
    %c0_11 = arith.constant 0 : index
    %c0_12 = arith.constant 0 : index
    %16 = vector.load %arg6[%c0_11, %c0_12] : memref<8x1xf32, #tpu.memory_space<vmem>>, vector<8x1xf32>
    tpu.vector_store %arg6[%c0_11, %c0_12], %15 {strides = array<i32>} : memref<8x1xf32, #tpu.memory_space<vmem>>, vector<8x1xf32>,
    %c0_13 = arith.constant 0 : index
    %c0_14 = arith.constant 0 : index
    %17 = vector.load %arg7[%c0_13, %c0_14] : memref<8x1xf32, #tpu.memory_space<vmem>>, vector<8x1xf32>
    %18 = arith.mulf %4, %4 : vector<8x128xf32>
    %cst_15 = arith.constant dense<0.000000e+00> : vector<8xf32>
    %19 = vector.multi_reduction <add>, %18, %cst_15 [1] : vector<8x128xf32> to vector<8xf32>
    %20 = vector.shape_cast %19 : vector<8xf32> to vector<8x1xf32>
    %21 = arith.addf %17, %20 : vector<8x1xf32>
    %c0_16 = arith.constant 0 : index
    %c0_17 = arith.constant 0 : index
    %22 = vector.load %arg7[%c0_16, %c0_17] : memref<8x1xf32, #tpu.memory_space<vmem>>, vector<8x1xf32>
    tpu.vector_store %arg7[%c0_16, %c0_17], %21 {strides = array<i32>} : memref<8x1xf32, #tpu.memory_space<vmem>>, vector<8x1xf32>,
    %c0_i32_18 = arith.constant 0 : i32
    %23 = arith.cmpi eq, %arg1, %c0_i32_18 : i32
    %24 = arith.extui %23 : i1 to i32
    %c0_i32_19 = arith.constant 0 : i32
    %25 = arith.cmpi ne, %24, %c0_i32_19 : i32
    scf.if %25 {
      %c0_20 = arith.constant 0 : index
      %c0_21 = arith.constant 0 : index
      %26 = vector.load %arg6[%c0_20, %c0_21] : memref<8x1xf32, #tpu.memory_space<vmem>>, vector<8x1xf32>
      %27 = math.sqrt %26 : vector<8x1xf32>
      %cst_22 = arith.constant 9.99999993E-9 : f32
      %28 = vector.broadcast %cst_22 : f32 to vector<8x1xf32>
      %29 = arith.maximumf %27, %28 : vector<8x1xf32>
      %c0_23 = arith.constant 0 : index
      %c0_24 = arith.constant 0 : index
      %30 = vector.load %arg7[%c0_23, %c0_24] : memref<8x1xf32, #tpu.memory_space<vmem>>, vector<8x1xf32>
      %31 = math.sqrt %30 : vector<8x1xf32>
      %cst_25 = arith.constant 9.99999993E-9 : f32
      %32 = vector.broadcast %cst_25 : f32 to vector<8x1xf32>
      %33 = arith.maximumf %31, %32 : vector<8x1xf32>
      %c0_26 = arith.constant 0 : index
      %c0_27 = arith.constant 0 : index
      %34 = vector.load %arg5[%c0_26, %c0_27] : memref<8x1xf32, #tpu.memory_space<vmem>>, vector<8x1xf32>
      %35 = arith.mulf %29, %33 : vector<8x1xf32>
      %36 = arith.divf %34, %35 : vector<8x1xf32>
      %c0_28 = arith.constant 0 : index
      %c0_29 = arith.constant 0 : index
      %37 = vector.load %arg4[%c0_28, %c0_29] : memref<8x1xf32, #tpu.memory_space<vmem>>, vector<8x1xf32>
      tpu.vector_store %arg4[%c0_28, %c0_29], %36 {strides = array<i32>} : memref<8x1xf32, #tpu.memory_space<vmem>>, vector<8x1xf32>,
    } else {
    }
    return
  }
  func.func @transform_0(%arg0: i32, %arg1: i32) -> (i32, i32) {
    %c0_i32 = arith.constant 0 : i32
    return %arg0, %arg1 : i32, i32
  }
  func.func @transform_1(%arg0: i32, %arg1: i32) -> (i32, i32) {
    %c0_i32 = arith.constant 0 : i32
    return %arg0, %arg1 : i32, i32
  }
  func.func @transform_2(%arg0: i32, %arg1: i32) -> (i32, i32) {
    %c0_i32 = arith.constant 0 : i32
    %c0_i32_0 = arith.constant 0 : i32
    return %arg0, %c0_i32 : i32, i32
  }
}

</mosaic_0001>

<bundles_post_ra>
// kernel: tpu_custom_call.1
= control target key start
LH: loop header
LB: loop body
LE: loop exit
PB: predicated region body
PF: predicated region fallthrough
CT: control target
= control target key end

     0   :  { %7 = vsyncpa [#allocation6], 0  ;;  %s218_s0 = inlined_call_operand.hbm [shape: f32[8,128], index: 0, kind: input, shape index: {}]   ;;  %s219_s1 = inlined_call_operand.hbm [shape: f32[8,128], index: 1, kind: input, shape index: {}]   ;;  %s220_s2 = inlined_call_operand.vmem [shape: f32[8,1], index: 2, kind: output, shape index: {}]  }
   0x1   :  { %s14_s11 = sshll.u32 %s218_s0, 4  ;;  %s15_s11 = int_to_ptr.hbm [resolvable:$true] %s14_s11 }
   0x2   :  { %8 = vsyncpa [#allocation8], 0  ;;  %s184_s12 = smov [#allocation5]   ;;  %s25_s16 = sshll.u32 %s219_s1, 4  ;;  %s26_s16 = int_to_ptr.hbm [resolvable:$true] %s25_s16 }
   0x3   :  { %s16_s13 = sshll.u32 %s184_s12, 4  ;;  %s185_s17 = smov [#allocation7]   ;;  %s17_s13 = int_to_ptr.vmem [resolvable:$true] %s16_s13 }
   0x4   :  { %19 = dma.hbm_to_vmem [thread:$0]  %s15_s11, 128, %s17_s13, [#allocation6]  }
   0x5   :  { %s27_s18 = sshll.u32 %s185_s17, 4  ;;  %s28_s18 = int_to_ptr.vmem [resolvable:$true] %s27_s18 }
   0x6   :  { %30 = dma.hbm_to_vmem [thread:$0]  %s26_s16, 128, %s28_s18, [#allocation8]  }
   0x7   :  { %180 = dma.done.wait [#allocation6], 128  }
   0x8   :  { %181 = vsyncadd [#allocation6], 4294967168 }
   0x9   :  { %182 = dma.done.wait [#allocation8], 128  }
   0xa   :  { %183 = vsyncadd [#allocation8], 4294967168  ;;  %vm43_vm0 = vcmask 7168   ;;  %v186_v0 = vmov 0.0   ;;  %v47_v1 = vld [vmem:[#allocation5] sm:$0xff]  ;;  %v48_v2 = vld [vmem:[#allocation7] sm:$0xff] }
   0xb   :  { %45 = vst.msk [vmem:[#allocation3] sm:$0xff] %vm43_vm0, %v186_v0  ;;  %v57_v3 = vmul.f32 %v47_v1, %v47_v1  ;;  %v50_v4 = vmul.f32 %v48_v2, %v47_v1  ;;  %v63_v5 = vmul.f32 %v48_v2, %v48_v2 }
   0xc   :  { %44 = vst.msk [vmem:[#allocation2] sm:$0xff] %vm43_vm0, %v186_v0 }
   0xd   :  { %46 = vst.msk [vmem:[#allocation4] sm:$0xff] %vm43_vm0, %v186_v0  ;;  %58 = vadd.xlane.f32.xlu0 %v57_v3  ;;  %51 = vadd.xlane.f32.xlu1 %v50_v4 }
  0x12   :  { %v56_v6 = vld [vmem:[#allocation3] sm:$0xff] }
  0x13   :  { %v49_v14 = vld [vmem:[#allocation2] sm:$0xff] }
  0x14   :  { %v62_v9 = vld [vmem:[#allocation4] sm:$0xff] }
  0x15   :  { %64 = vadd.xlane.f32.xlu0 %v63_v5 }
  0x80   :  { %v59_v7 = vpop.xlane.xlu0 %58  ;;  %v52_v13 = vpop.xlane.xlu1 %51 }
  0x81   :  { %v60_v8 = vadd.f32 %v59_v7, %v56_v6  ;;  %v53_v15 = vadd.f32 %v52_v13, %v49_v14 }
  0x83   :  { %61 = vst.msk [vmem:[#allocation3] sm:$0xff] %vm43_vm0, %v60_v8 }
  0x84   :  { %55 = vst.msk [vmem:[#allocation2] sm:$0xff] %vm43_vm0, %v53_v15 }
  0x88   :  { %v65_v10 = vpop.xlane.xlu0 %64 }
  0x89   :  { %v66_v11 = vadd.f32 %v65_v10, %v62_v9 }
  0x8a   :  { %v71_v12 = vld [vmem:[#allocation3] sm:$0xff] }
  0x8b   :  { %126 = vrsqrt.f32 %v71_v12  ;;  %67 = vst.msk [vmem:[#allocation4] sm:$0xff] %vm43_vm0, %v66_v11  ;;  %vm79_vm1 = vcmp.eq.f32.partialorder %v71_v12, inf  ;;  %v82_v31 = vand.u32 2147483648, %v71_v12  ;;  %vm81_vm2 = vcmp.eq.f32.partialorder %v71_v12, 0.0  ;;  %v99_v47 = vld [vmem:[#allocation2] sm:$0xff] }
  0x91   :  { %v127_v16 = vpop.eup %126 }
  0x92   :  { %v73_v17 = vmul.f32 %v127_v16, %v71_v12  ;;  %v85_v18 = vld [vmem:[#allocation4] sm:$0xff] }
  0x93   :  { %128 = vrsqrt.f32 %v85_v18  ;;  %vm93_vm3 = vcmp.eq.f32.partialorder %v85_v18, inf  ;;  %v96_v34 = vand.u32 2147483648, %v85_v18  ;;  %vm95_vm4 = vcmp.eq.f32.partialorder %v85_v18, 0.0 }
  0x94   :  { %v74_v19 = vmul.f32 %v127_v16, %v73_v17 }
  0x96   :  { %v75_v20 = vmul.f32 0.5, %v74_v19 }
  0x98   :  { %v76_v21 = vsub.f32 1.5, %v75_v20 }
  0x99   :  { %v129_v22 = vpop.eup %128 }
  0x9a   :  { %v77_v23 = vmul.f32 %v127_v16, %v76_v21  ;;  %v87_v24 = vmul.f32 %v129_v22, %v85_v18 }
  0x9c   :  { %v88_v25 = vmul.f32 %v129_v22, %v87_v24  ;;  %v78_v26 = vmul.f32 %v77_v23, %v71_v12 }
  0x9e   :  { %v89_v27 = vmul.f32 0.5, %v88_v25  ;;  %v80_v29 = vsel %vm79_vm1, %v71_v12, %v78_v26 }
  0x9f   :  { %v83_v33 = vsel %vm81_vm2, %v82_v31, %v80_v29 }
  0xa0   :  { %v90_v28 = vsub.f32 1.5, %v89_v27  ;;  %v84_v37 = vmax.f32 %v83_v33, 1e-08 }
  0xa2   :  { %v91_v30 = vmul.f32 %v129_v22, %v90_v28 }
  0xa4   :  { %v92_v32 = vmul.f32 %v91_v30, %v85_v18 }
  0xa6   :  { %v94_v35 = vsel %vm93_vm3, %v85_v18, %v92_v32 }
  0xa7   :  { %v97_v36 = vsel %vm95_vm4, %v96_v34, %v94_v35 }
  0xa8   :  { %v98_v38 = vmax.f32 %v97_v36, 1e-08 }
  0xaa   :  { %v100_v39 = vmul.f32 %v98_v38, %v84_v37 }
  0xac   :  { %130 = vrcp.f32 %v100_v39  ;;  %v112_v43 = vand.u32 2147483648, %v100_v39  ;;  %v110_v45 = vand.u32 2147483647, %v100_v39  ;;  %vm106_vm6 = vweird.f32 %v100_v39 }
  0xae   :  { %v113_v48 = vor.u32 1.1754944e-38, %v112_v43  ;;  %vm111_vm8 = vcmp.eq.f32.partialorder %v110_v45, 8.507059e+37 }
  0xb2   :  { %v131_v40 = vpop.eup %130 }
  0xb3   :  { %v102_v41 = vmul.f32 %v131_v40, %v100_v39  ;;  %vm107_vm5 = vweird.f32 %v131_v40 }
  0xb4   :  { %vm108_vm7 = vmor %vm106_vm6, %vm107_vm5 }
  0xb5   :  { %v103_v42 = vsub.f32 1.0, %v102_v41 }
  0xb7   :  { %v104_v44 = vmul.f32 %v131_v40, %v103_v42 }
  0xb9   :  { %v105_v46 = vadd.f32 %v131_v40, %v104_v44 }
  0xbb   :  { %v109_v49 = vsel %vm108_vm7, %v131_v40, %v105_v46 }
  0xbc   :  { %v114_v50 = vsel %vm111_vm8, %v113_v48, %v109_v49 }
  0xbd   :  { %v115_v51 = vmul.f32 %v114_v50, %v99_v47 }
  0xbf   :  { %116 = vst.msk [vmem:[%s220_s2] sm:$0xff] %vm43_vm0, %v115_v51 }
  0xc0   :  { %121 = vsyncpa [#allocation6], 1 }
  0xc1   :  { %122 = vsyncpa [#allocation8], 1 }

</bundles_post_ra>
